<compile_context>
chip_gen: v7x
topology: tpu7x:2x2x1
jax: 0.10.0
libtpu: 0.0.40
codegen_flags: <defaults>
</compile_context>

<pallas_src>
import functools

import jax
import jax.numpy as jnp
from jax.experimental import pallas as pl
from jax.experimental.pallas import tpu as pltpu


def _residual_conv_kernel(x_ref, w_ref, m_ref, b_ref, o_ref, xpad_ref,
                          *, H, W, n_tile):
    # x_ref:    (n_tile, C, H*W)   batch tile; channels on sublanes, flattened
    #                              spatial on the 128-lane axis (HW multiple of 128).
    # w_ref:    (9, C, C)          per-tap conv weights (constant across grid).
    # m_ref:    (2, H*W)           precomputed left/right column-border masks.
    # b_ref:    (C, 1)             bias column (constant across grid).
    # o_ref:    (n_tile, C, H*W)   out = x + conv3x3(x) + b
    # xpad_ref: (n_tile, C, H*W + 2*(W+1))  flat row with zero halo (scratch).
    C = x_ref.shape[1]
    HW = H * W
    halo = W + 1                      # one halo row + one halo column per side

    w_all = w_ref[...]                # (9, C, C)   tiny, lives in vregs
    masks = m_ref[...]                # (2, HW)
    bias = b_ref[...]                 # (C, 1)

    for i in range(n_tile):           # static unroll over images in this block
        x = x_ref[i]                  # (C, HW): the only HBM read of this image
        xp = xpad_ref.at[i]           # (C, HW + 2*halo) scratch view

        # Zero only the halo columns; the interior is fully overwritten by x.
        xp[:, 0:halo] = jnp.zeros((C, halo), x.dtype)
        xp[:, halo + HW:] = jnp.zeros((C, halo), x.dtype)
        xp[:, halo:halo + HW] = x

        # Tap-loop conv: nine (C_out, C_in) @ (C_in, HW) MXU matmuls accumulated
        # in an f32 register accumulator (no materialized im2col buffer).
        acc = jnp.zeros((C, HW), jnp.float32)
        for kh in range(3):
            for kw in range(3):
                dh, dw = kh - 1, kw - 1
                start = halo + dh * W + dw            # static per-tap offset
                window = xp[:, start:start + HW]      # (C, HW)
                # Left/right image borders: row-flattening makes the +/-1
                # column taps wrap into the neighbouring row -> zero them with
                # the precomputed (host-built) masks.  Top/bottom borders are
                # already zero thanks to the halo.
                if dw == -1:
                    window = window * masks[0:1, :]
                elif dw == 1:
                    window = window * masks[1:2, :]
                acc = acc + jnp.dot(w_all[kh * 3 + kw], window,
                                    preferred_element_type=jnp.float32)

        # Epilogue: residual + bias as a broadcast VPU add, single lane-dense store.
        o_ref[i] = (x + acc + bias).astype(o_ref.dtype)


def _pick_n_tile(N):
    """Largest divisor of N that still leaves >=2 grid steps (v7x megacore),
    capped so the unrolled in-kernel batch loop stays small."""
    if N < 2:
        return 1
    target = min(N // 2, 8)
    for t in range(target, 0, -1):
        if N % t == 0:
            return t
    return 1


def residual_block(x_nchw, w_oihw, b):
    """Fused out = x + Conv2d(C, C, 3, padding=1)(x); NCHW in, NCHW out."""
    N, C, H, W = x_nchw.shape
    HW = H * W

    # Layout-only glue: flatten spatial dims so each block is a lane-dense
    # (C, H*W) tile.  No NCHW<->NHWC transposes (those are HBM round trips).
    x_flat = x_nchw.reshape(N, C, HW)

    # Per-tap weight matrices (9, C_out, C_in); bias kept separate (epilogue add).
    w_taps = jnp.transpose(w_oihw, (2, 3, 0, 1)).reshape(9, C, C)
    b_col = b.reshape(C, 1)

    # Column-border masks, built once on the host (zero where a +/-1 column tap
    # would wrap across the image's left/right edge).
    col = jnp.arange(HW, dtype=jnp.int32) % W
    masks = jnp.stack([
        (col >= 1).astype(x_flat.dtype),       # for dw == -1 taps
        (col <= W - 2).astype(x_flat.dtype),   # for dw == +1 taps
    ])                                          # (2, HW)

    n_tile = _pick_n_tile(N)
    grid = (N // n_tile,)

    kernel = functools.partial(_residual_conv_kernel, H=H, W=W, n_tile=n_tile)

    out_flat = pl.pallas_call(
        kernel,
        out_shape=jax.ShapeDtypeStruct((N, C, HW), x_flat.dtype),
        grid_spec=pltpu.PrefetchScalarGridSpec(
            num_scalar_prefetch=0,
            grid=grid,
            in_specs=[
                pl.BlockSpec((n_tile, C, HW), lambda n: (n, 0, 0)),
                pl.BlockSpec((9, C, C), lambda n: (0, 0, 0)),      # constant
                pl.BlockSpec((2, HW), lambda n: (0, 0)),           # constant
                pl.BlockSpec((C, 1), lambda n: (0, 0)),            # constant
            ],
            out_specs=pl.BlockSpec((n_tile, C, HW), lambda n: (n, 0, 0)),
            scratch_shapes=[
                pltpu.VMEM((n_tile, C, HW + 2 * (W + 1)), jnp.float32),
            ],
        ),
        compiler_params=pltpu.CompilerParams(
            # Batch tiles are embarrassingly parallel -> megacore sharding.
            dimension_semantics=("parallel",),
        ),
    )(x_flat, w_taps, masks, b_col)

    return out_flat.reshape(N, C, H, W)


if __name__ == "__main__":
    key = jax.random.PRNGKey(0)
    k_x, k_w, k_b = jax.random.split(key, 3)

    N, C, H, W = 2, 4, 16, 16
    x = jax.random.normal(k_x, (N, C, H, W), jnp.float32)

    # Deterministic synthetic Conv2d(C, C, 3, padding=1) params (torch OIHW
    # layout, torch-style uniform(-1/sqrt(fan_in), 1/sqrt(fan_in)) init).
    fan_in = C * 3 * 3
    bound = 1.0 / (fan_in ** 0.5)
    w = jax.random.uniform(k_w, (C, C, 3, 3), jnp.float32, -bound, bound)
    b = jax.random.uniform(k_b, (C,), jnp.float32, -bound, bound)

    out = residual_block(x, w, b)
    jax.block_until_ready(out)

    # Pure-JAX reference: x + conv3x3(x) + b, NCHW end to end.
    conv = jax.lax.conv_general_dilated(
        x, w, window_strides=(1, 1), padding="SAME",
        dimension_numbers=("NCHW", "OIHW", "NCHW"),
    ) + b.reshape(1, C, 1, 1)
    ref = x + conv

    assert out.shape == x.shape and out.dtype == x.dtype
    assert jnp.allclose(out, ref, atol=1e-4, rtol=1e-4)
    print("KERNEL_OK")
</pallas_src>

<mosaic_0001>
module attributes {stable_mosaic.version = 11 : i64} {
  func.func @_residual_conv_kernel(%arg0: i32, %arg1: memref<1x4x256xf32, #tpu.memory_space<vmem>>, %arg2: memref<9x4x4xf32, #tpu.memory_space<vmem>>, %arg3: memref<2x256xf32, #tpu.memory_space<vmem>>, %arg4: memref<4x1xf32, #tpu.memory_space<vmem>>, %arg5: memref<1x4x256xf32, #tpu.memory_space<vmem>>, %arg6: memref<1x4x290xf32, #tpu.memory_space<vmem>>) attributes {dimension_semantics = [#tpu.dimension_semantics<parallel>], iteration_bounds = array<i64: 2>, scalar_prefetch = 0 : i64, scratch_operands = 1 : i64, tpu.core_type = #tpu.core_type<tc>, window_params = [{transform_indices = @transform_0, window_bounds = array<i64: 1, 4, 256>}, {pipeline_mode = #tpu.pipeline_mode<synchronous>, transform_indices = @transform_1, window_bounds = array<i64: 9, 4, 4>}, {pipeline_mode = #tpu.pipeline_mode<synchronous>, transform_indices = @transform_2, window_bounds = array<i64: 2, 256>}, {pipeline_mode = #tpu.pipeline_mode<synchronous>, transform_indices = @transform_3, window_bounds = array<i64: 4, 1>}, {transform_indices = @transform_4, window_bounds = array<i64: 1, 4, 256>}]} {
    %c0 = arith.constant 0 : index
    %c0_0 = arith.constant 0 : index
    %c0_1 = arith.constant 0 : index
    %0 = vector.load %arg2[%c0, %c0_0, %c0_1] : memref<9x4x4xf32, #tpu.memory_space<vmem>>, vector<9x4x4xf32>
    %c0_2 = arith.constant 0 : index
    %c0_3 = arith.constant 0 : index
    %1 = vector.load %arg3[%c0_2, %c0_3] : memref<2x256xf32, #tpu.memory_space<vmem>>, vector<2x256xf32>
    %c0_4 = arith.constant 0 : index
    %c0_5 = arith.constant 0 : index
    %2 = vector.load %arg4[%c0_4, %c0_5] : memref<4x1xf32, #tpu.memory_space<vmem>>, vector<4x1xf32>
    %c0_6 = arith.constant 0 : index
    %c0_7 = arith.constant 0 : index
    %c0_8 = arith.constant 0 : index
    %3 = vector.load %arg1[%c0_6, %c0_7, %c0_8] : memref<1x4x256xf32, #tpu.memory_space<vmem>>, vector<1x4x256xf32>
    %4 = vector.shape_cast %3 : vector<1x4x256xf32> to vector<4x256xf32>
    %cst = arith.constant 0.000000e+00 : f32
    %5 = vector.broadcast %cst : f32 to vector<4x17xf32>
    %c0_i32 = arith.constant 0 : i32
    %c0_i32_9 = arith.constant 0 : i32
    %c0_i32_10 = arith.constant 0 : i32
    %6 = tpu.memref_slice %arg6[%c0_i32, %c0_i32_9, %c0_i32_10] : memref<1x4x290xf32, #tpu.memory_space<vmem>> -> memref<1x4x290xf32, #tpu.memory_space<vmem>>
    %7 = tpu.memref_squeeze %6 : memref<1x4x290xf32, #tpu.memory_space<vmem>> -> memref<4x290xf32, #tpu.memory_space<vmem>>
    %c0_11 = arith.constant 0 : index
    %c0_12 = arith.constant 0 : index
    %8 = vector.load %7[%c0_11, %c0_12] : memref<4x290xf32, #tpu.memory_space<vmem>>, vector<4x17xf32>
    tpu.vector_store %7[%c0_11, %c0_12], %5 {strides = array<i32>} : memref<4x290xf32, #tpu.memory_space<vmem>>, vector<4x17xf32>,
    %cst_13 = arith.constant 0.000000e+00 : f32
    %9 = vector.broadcast %cst_13 : f32 to vector<4x17xf32>
    %c0_i32_14 = arith.constant 0 : i32
    %c0_i32_15 = arith.constant 0 : i32
    %c0_i32_16 = arith.constant 0 : i32
    %10 = tpu.memref_slice %arg6[%c0_i32_14, %c0_i32_15, %c0_i32_16] : memref<1x4x290xf32, #tpu.memory_space<vmem>> -> memref<1x4x290xf32, #tpu.memory_space<vmem>>
    %11 = tpu.memref_squeeze %10 : memref<1x4x290xf32, #tpu.memory_space<vmem>> -> memref<4x290xf32, #tpu.memory_space<vmem>>
    %c0_17 = arith.constant 0 : index
    %c273 = arith.constant 273 : index
    %12 = vector.load %11[%c0_17, %c273] : memref<4x290xf32, #tpu.memory_space<vmem>>, vector<4x17xf32>
    tpu.vector_store %11[%c0_17, %c273], %9 {strides = array<i32>} : memref<4x290xf32, #tpu.memory_space<vmem>>, vector<4x17xf32>,
    %c0_i32_18 = arith.constant 0 : i32
    %c0_i32_19 = arith.constant 0 : i32
    %c0_i32_20 = arith.constant 0 : i32
    %13 = tpu.memref_slice %arg6[%c0_i32_18, %c0_i32_19, %c0_i32_20] : memref<1x4x290xf32, #tpu.memory_space<vmem>> -> memref<1x4x290xf32, #tpu.memory_space<vmem>>
    %14 = tpu.memref_squeeze %13 : memref<1x4x290xf32, #tpu.memory_space<vmem>> -> memref<4x290xf32, #tpu.memory_space<vmem>>
    %c0_21 = arith.constant 0 : index
    %c17 = arith.constant 17 : index
    %15 = vector.load %14[%c0_21, %c17] : memref<4x290xf32, #tpu.memory_space<vmem>>, vector<4x256xf32>
    tpu.vector_store %14[%c0_21, %c17], %4 {strides = array<i32>} : memref<4x290xf32, #tpu.memory_space<vmem>>, vector<4x256xf32>,
    %cst_22 = arith.constant 0.000000e+00 : f32
    %16 = vector.broadcast %cst_22 : f32 to vector<4x256xf32>
    %c0_i32_23 = arith.constant 0 : i32
    %c0_i32_24 = arith.constant 0 : i32
    %c0_i32_25 = arith.constant 0 : i32
    %17 = tpu.memref_slice %arg6[%c0_i32_23, %c0_i32_24, %c0_i32_25] : memref<1x4x290xf32, #tpu.memory_space<vmem>> -> memref<1x4x290xf32, #tpu.memory_space<vmem>>
    %18 = tpu.memref_squeeze %17 : memref<1x4x290xf32, #tpu.memory_space<vmem>> -> memref<4x290xf32, #tpu.memory_space<vmem>>
    %c0_26 = arith.constant 0 : index
    %c0_27 = arith.constant 0 : index
    %19 = vector.load %18[%c0_26, %c0_27] : memref<4x290xf32, #tpu.memory_space<vmem>>, vector<4x256xf32>
    %20 = vector.extract_strided_slice %1 {offsets = [0, 0], sizes = [1, 256], strides = [1, 1]} : vector<2x256xf32> to vector<1x256xf32>
    %21 = vector.broadcast %20 : vector<1x256xf32> to vector<4x256xf32>
    %22 = arith.mulf %19, %21 : vector<4x256xf32>
    %23 = vector.extract_strided_slice %0 {offsets = [0, 0, 0], sizes = [1, 4, 4], strides = [1, 1, 1]} : vector<9x4x4xf32> to vector<1x4x4xf32>
    %24 = vector.shape_cast %23 : vector<1x4x4xf32> to vector<4x4xf32>
    %cst_28 = arith.constant dense<0.000000e+00> : vector<4x256xf32>
    %25 = tpu.matmul %24, %22, %cst_28 {dimension_numbers = #tpu.dot_dimension_numbers<[1], [0], [0], [1], [0, 0, 1, 1], [], []>} : vector<4x4xf32>, vector<4x256xf32>, vector<4x256xf32> -> vector<4x256xf32>
    %26 = arith.addf %16, %25 : vector<4x256xf32>
    %c0_i32_29 = arith.constant 0 : i32
    %c0_i32_30 = arith.constant 0 : i32
    %c0_i32_31 = arith.constant 0 : i32
    %27 = tpu.memref_slice %arg6[%c0_i32_29, %c0_i32_30, %c0_i32_31] : memref<1x4x290xf32, #tpu.memory_space<vmem>> -> memref<1x4x290xf32, #tpu.memory_space<vmem>>
    %28 = tpu.memref_squeeze %27 : memref<1x4x290xf32, #tpu.memory_space<vmem>> -> memref<4x290xf32, #tpu.memory_space<vmem>>
    %c0_32 = arith.constant 0 : index
    %c1 = arith.constant 1 : index
    %29 = vector.load %28[%c0_32, %c1] : memref<4x290xf32, #tpu.memory_space<vmem>>, vector<4x256xf32>
    %30 = vector.extract_strided_slice %0 {offsets = [1, 0, 0], sizes = [1, 4, 4], strides = [1, 1, 1]} : vector<9x4x4xf32> to vector<1x4x4xf32>
    %31 = vector.shape_cast %30 : vector<1x4x4xf32> to vector<4x4xf32>
    %cst_33 = arith.constant dense<0.000000e+00> : vector<4x256xf32>
    %32 = tpu.matmul %31, %29, %cst_33 {dimension_numbers = #tpu.dot_dimension_numbers<[1], [0], [0], [1], [0, 0, 1, 1], [], []>} : vector<4x4xf32>, vector<4x256xf32>, vector<4x256xf32> -> vector<4x256xf32>
    %33 = arith.addf %26, %32 : vector<4x256xf32>
    %c0_i32_34 = arith.constant 0 : i32
    %c0_i32_35 = arith.constant 0 : i32
    %c0_i32_36 = arith.constant 0 : i32
    %34 = tpu.memref_slice %arg6[%c0_i32_34, %c0_i32_35, %c0_i32_36] : memref<1x4x290xf32, #tpu.memory_space<vmem>> -> memref<1x4x290xf32, #tpu.memory_space<vmem>>
    %35 = tpu.memref_squeeze %34 : memref<1x4x290xf32, #tpu.memory_space<vmem>> -> memref<4x290xf32, #tpu.memory_space<vmem>>
    %c0_37 = arith.constant 0 : index
    %c2 = arith.constant 2 : index
    %36 = vector.load %35[%c0_37, %c2] : memref<4x290xf32, #tpu.memory_space<vmem>>, vector<4x256xf32>
    %37 = vector.extract_strided_slice %1 {offsets = [1, 0], sizes = [1, 256], strides = [1, 1]} : vector<2x256xf32> to vector<1x256xf32>
    %38 = vector.broadcast %37 : vector<1x256xf32> to vector<4x256xf32>
    %39 = arith.mulf %36, %38 : vector<4x256xf32>
    %40 = vector.extract_strided_slice %0 {offsets = [2, 0, 0], sizes = [1, 4, 4], strides = [1, 1, 1]} : vector<9x4x4xf32> to vector<1x4x4xf32>
    %41 = vector.shape_cast %40 : vector<1x4x4xf32> to vector<4x4xf32>
    %cst_38 = arith.constant dense<0.000000e+00> : vector<4x256xf32>
    %42 = tpu.matmul %41, %39, %cst_38 {dimension_numbers = #tpu.dot_dimension_numbers<[1], [0], [0], [1], [0, 0, 1, 1], [], []>} : vector<4x4xf32>, vector<4x256xf32>, vector<4x256xf32> -> vector<4x256xf32>
    %43 = arith.addf %33, %42 : vector<4x256xf32>
    %c0_i32_39 = arith.constant 0 : i32
    %c0_i32_40 = arith.constant 0 : i32
    %c0_i32_41 = arith.constant 0 : i32
    %44 = tpu.memref_slice %arg6[%c0_i32_39, %c0_i32_40, %c0_i32_41] : memref<1x4x290xf32, #tpu.memory_space<vmem>> -> memref<1x4x290xf32, #tpu.memory_space<vmem>>
    %45 = tpu.memref_squeeze %44 : memref<1x4x290xf32, #tpu.memory_space<vmem>> -> memref<4x290xf32, #tpu.memory_space<vmem>>
    %c0_42 = arith.constant 0 : index
    %c16 = arith.constant 16 : index
    %46 = vector.load %45[%c0_42, %c16] : memref<4x290xf32, #tpu.memory_space<vmem>>, vector<4x256xf32>
    %47 = vector.extract_strided_slice %1 {offsets = [0, 0], sizes = [1, 256], strides = [1, 1]} : vector<2x256xf32> to vector<1x256xf32>
    %48 = vector.broadcast %47 : vector<1x256xf32> to vector<4x256xf32>
    %49 = arith.mulf %46, %48 : vector<4x256xf32>
    %50 = vector.extract_strided_slice %0 {offsets = [3, 0, 0], sizes = [1, 4, 4], strides = [1, 1, 1]} : vector<9x4x4xf32> to vector<1x4x4xf32>
    %51 = vector.shape_cast %50 : vector<1x4x4xf32> to vector<4x4xf32>
    %cst_43 = arith.constant dense<0.000000e+00> : vector<4x256xf32>
    %52 = tpu.matmul %51, %49, %cst_43 {dimension_numbers = #tpu.dot_dimension_numbers<[1], [0], [0], [1], [0, 0, 1, 1], [], []>} : vector<4x4xf32>, vector<4x256xf32>, vector<4x256xf32> -> vector<4x256xf32>
    %53 = arith.addf %43, %52 : vector<4x256xf32>
    %c0_i32_44 = arith.constant 0 : i32
    %c0_i32_45 = arith.constant 0 : i32
    %c0_i32_46 = arith.constant 0 : i32
    %54 = tpu.memref_slice %arg6[%c0_i32_44, %c0_i32_45, %c0_i32_46] : memref<1x4x290xf32, #tpu.memory_space<vmem>> -> memref<1x4x290xf32, #tpu.memory_space<vmem>>
    %55 = tpu.memref_squeeze %54 : memref<1x4x290xf32, #tpu.memory_space<vmem>> -> memref<4x290xf32, #tpu.memory_space<vmem>>
    %c0_47 = arith.constant 0 : index
    %c17_48 = arith.constant 17 : index
    %56 = vector.load %55[%c0_47, %c17_48] : memref<4x290xf32, #tpu.memory_space<vmem>>, vector<4x256xf32>
    %57 = vector.extract_strided_slice %0 {offsets = [4, 0, 0], sizes = [1, 4, 4], strides = [1, 1, 1]} : vector<9x4x4xf32> to vector<1x4x4xf32>
    %58 = vector.shape_cast %57 : vector<1x4x4xf32> to vector<4x4xf32>
    %cst_49 = arith.constant dense<0.000000e+00> : vector<4x256xf32>
    %59 = tpu.matmul %58, %56, %cst_49 {dimension_numbers = #tpu.dot_dimension_numbers<[1], [0], [0], [1], [0, 0, 1, 1], [], []>} : vector<4x4xf32>, vector<4x256xf32>, vector<4x256xf32> -> vector<4x256xf32>
    %60 = arith.addf %53, %59 : vector<4x256xf32>
    %c0_i32_50 = arith.constant 0 : i32
    %c0_i32_51 = arith.constant 0 : i32
    %c0_i32_52 = arith.constant 0 : i32
    %61 = tpu.memref_slice %arg6[%c0_i32_50, %c0_i32_51, %c0_i32_52] : memref<1x4x290xf32, #tpu.memory_space<vmem>> -> memref<1x4x290xf32, #tpu.memory_space<vmem>>
    %62 = tpu.memref_squeeze %61 : memref<1x4x290xf32, #tpu.memory_space<vmem>> -> memref<4x290xf32, #tpu.memory_space<vmem>>
    %c0_53 = arith.constant 0 : index
    %c18 = arith.constant 18 : index
    %63 = vector.load %62[%c0_53, %c18] : memref<4x290xf32, #tpu.memory_space<vmem>>, vector<4x256xf32>
    %64 = vector.extract_strided_slice %1 {offsets = [1, 0], sizes = [1, 256], strides = [1, 1]} : vector<2x256xf32> to vector<1x256xf32>
    %65 = vector.broadcast %64 : vector<1x256xf32> to vector<4x256xf32>
    %66 = arith.mulf %63, %65 : vector<4x256xf32>
    %67 = vector.extract_strided_slice %0 {offsets = [5, 0, 0], sizes = [1, 4, 4], strides = [1, 1, 1]} : vector<9x4x4xf32> to vector<1x4x4xf32>
    %68 = vector.shape_cast %67 : vector<1x4x4xf32> to vector<4x4xf32>
    %cst_54 = arith.constant dense<0.000000e+00> : vector<4x256xf32>
    %69 = tpu.matmul %68, %66, %cst_54 {dimension_numbers = #tpu.dot_dimension_numbers<[1], [0], [0], [1], [0, 0, 1, 1], [], []>} : vector<4x4xf32>, vector<4x256xf32>, vector<4x256xf32> -> vector<4x256xf32>
    %70 = arith.addf %60, %69 : vector<4x256xf32>
    %c0_i32_55 = arith.constant 0 : i32
    %c0_i32_56 = arith.constant 0 : i32
    %c0_i32_57 = arith.constant 0 : i32
    %71 = tpu.memref_slice %arg6[%c0_i32_55, %c0_i32_56, %c0_i32_57] : memref<1x4x290xf32, #tpu.memory_space<vmem>> -> memref<1x4x290xf32, #tpu.memory_space<vmem>>
    %72 = tpu.memref_squeeze %71 : memref<1x4x290xf32, #tpu.memory_space<vmem>> -> memref<4x290xf32, #tpu.memory_space<vmem>>
    %c0_58 = arith.constant 0 : index
    %c32 = arith.constant 32 : index
    %73 = vector.load %72[%c0_58, %c32] : memref<4x290xf32, #tpu.memory_space<vmem>>, vector<4x256xf32>
    %74 = vector.extract_strided_slice %1 {offsets = [0, 0], sizes = [1, 256], strides = [1, 1]} : vector<2x256xf32> to vector<1x256xf32>
    %75 = vector.broadcast %74 : vector<1x256xf32> to vector<4x256xf32>
    %76 = arith.mulf %73, %75 : vector<4x256xf32>
    %77 = vector.extract_strided_slice %0 {offsets = [6, 0, 0], sizes = [1, 4, 4], strides = [1, 1, 1]} : vector<9x4x4xf32> to vector<1x4x4xf32>
    %78 = vector.shape_cast %77 : vector<1x4x4xf32> to vector<4x4xf32>
    %cst_59 = arith.constant dense<0.000000e+00> : vector<4x256xf32>
    %79 = tpu.matmul %78, %76, %cst_59 {dimension_numbers = #tpu.dot_dimension_numbers<[1], [0], [0], [1], [0, 0, 1, 1], [], []>} : vector<4x4xf32>, vector<4x256xf32>, vector<4x256xf32> -> vector<4x256xf32>
    %80 = arith.addf %70, %79 : vector<4x256xf32>
    %c0_i32_60 = arith.constant 0 : i32
    %c0_i32_61 = arith.constant 0 : i32
    %c0_i32_62 = arith.constant 0 : i32
    %81 = tpu.memref_slice %arg6[%c0_i32_60, %c0_i32_61, %c0_i32_62] : memref<1x4x290xf32, #tpu.memory_space<vmem>> -> memref<1x4x290xf32, #tpu.memory_space<vmem>>
    %82 = tpu.memref_squeeze %81 : memref<1x4x290xf32, #tpu.memory_space<vmem>> -> memref<4x290xf32, #tpu.memory_space<vmem>>
    %c0_63 = arith.constant 0 : index
    %c33 = arith.constant 33 : index
    %83 = vector.load %82[%c0_63, %c33] : memref<4x290xf32, #tpu.memory_space<vmem>>, vector<4x256xf32>
    %84 = vector.extract_strided_slice %0 {offsets = [7, 0, 0], sizes = [1, 4, 4], strides = [1, 1, 1]} : vector<9x4x4xf32> to vector<1x4x4xf32>
    %85 = vector.shape_cast %84 : vector<1x4x4xf32> to vector<4x4xf32>
    %cst_64 = arith.constant dense<0.000000e+00> : vector<4x256xf32>
    %86 = tpu.matmul %85, %83, %cst_64 {dimension_numbers = #tpu.dot_dimension_numbers<[1], [0], [0], [1], [0, 0, 1, 1], [], []>} : vector<4x4xf32>, vector<4x256xf32>, vector<4x256xf32> -> vector<4x256xf32>
    %87 = arith.addf %80, %86 : vector<4x256xf32>
    %c0_i32_65 = arith.constant 0 : i32
    %c0_i32_66 = arith.constant 0 : i32
    %c0_i32_67 = arith.constant 0 : i32
    %88 = tpu.memref_slice %arg6[%c0_i32_65, %c0_i32_66, %c0_i32_67] : memref<1x4x290xf32, #tpu.memory_space<vmem>> -> memref<1x4x290xf32, #tpu.memory_space<vmem>>
    %89 = tpu.memref_squeeze %88 : memref<1x4x290xf32, #tpu.memory_space<vmem>> -> memref<4x290xf32, #tpu.memory_space<vmem>>
    %c0_68 = arith.constant 0 : index
    %c34 = arith.constant 34 : index
    %90 = vector.load %89[%c0_68, %c34] : memref<4x290xf32, #tpu.memory_space<vmem>>, vector<4x256xf32>
    %91 = vector.extract_strided_slice %1 {offsets = [1, 0], sizes = [1, 256], strides = [1, 1]} : vector<2x256xf32> to vector<1x256xf32>
    %92 = vector.broadcast %91 : vector<1x256xf32> to vector<4x256xf32>
    %93 = arith.mulf %90, %92 : vector<4x256xf32>
    %94 = vector.extract_strided_slice %0 {offsets = [8, 0, 0], sizes = [1, 4, 4], strides = [1, 1, 1]} : vector<9x4x4xf32> to vector<1x4x4xf32>
    %95 = vector.shape_cast %94 : vector<1x4x4xf32> to vector<4x4xf32>
    %cst_69 = arith.constant dense<0.000000e+00> : vector<4x256xf32>
    %96 = tpu.matmul %95, %93, %cst_69 {dimension_numbers = #tpu.dot_dimension_numbers<[1], [0], [0], [1], [0, 0, 1, 1], [], []>} : vector<4x4xf32>, vector<4x256xf32>, vector<4x256xf32> -> vector<4x256xf32>
    %97 = arith.addf %87, %96 : vector<4x256xf32>
    %98 = arith.addf %4, %97 : vector<4x256xf32>
    %99 = vector.broadcast %2 : vector<4x1xf32> to vector<4x256xf32>
    %100 = arith.addf %98, %99 : vector<4x256xf32>
    %c0_70 = arith.constant 0 : index
    %c0_71 = arith.constant 0 : index
    %c0_72 = arith.constant 0 : index
    %101 = vector.load %arg5[%c0_70, %c0_71, %c0_72] : memref<1x4x256xf32, #tpu.memory_space<vmem>>, vector<1x4x256xf32>
    %102 = vector.shape_cast %101 : vector<1x4x256xf32> to vector<4x256xf32>
    %103 = vector.shape_cast %100 : vector<4x256xf32> to vector<1x4x256xf32>
    tpu.vector_store %arg5[%c0_70, %c0_71, %c0_72], %103 {strides = array<i32>} : memref<1x4x256xf32, #tpu.memory_space<vmem>>, vector<1x4x256xf32>,
    return
  }
  func.func @transform_0(%arg0: i32) -> (i32, i32, i32) {
    %c0_i32 = arith.constant 0 : i32
    %c0_i32_0 = arith.constant 0 : i32
    %c0_i32_1 = arith.constant 0 : i32
    return %arg0, %c0_i32, %c0_i32_0 : i32, i32, i32
  }
  func.func @transform_1(%arg0: i32) -> (i32, i32, i32) {
    %c0_i32 = arith.constant 0 : i32
    %c0_i32_0 = arith.constant 0 : i32
    %c0_i32_1 = arith.constant 0 : i32
    %c0_i32_2 = arith.constant 0 : i32
    return %c0_i32, %c0_i32_0, %c0_i32_1 : i32, i32, i32
  }
  func.func @transform_2(%arg0: i32) -> (i32, i32) {
    %c0_i32 = arith.constant 0 : i32
    %c0_i32_0 = arith.constant 0 : i32
    %c0_i32_1 = arith.constant 0 : i32
    return %c0_i32, %c0_i32_0 : i32, i32
  }
  func.func @transform_3(%arg0: i32) -> (i32, i32) {
    %c0_i32 = arith.constant 0 : i32
    %c0_i32_0 = arith.constant 0 : i32
    %c0_i32_1 = arith.constant 0 : i32
    return %c0_i32, %c0_i32_0 : i32, i32
  }
  func.func @transform_4(%arg0: i32) -> (i32, i32, i32) {
    %c0_i32 = arith.constant 0 : i32
    %c0_i32_0 = arith.constant 0 : i32
    %c0_i32_1 = arith.constant 0 : i32
    return %arg0, %c0_i32, %c0_i32_0 : i32, i32, i32
  }
}

</mosaic_0001>

<bundles_post_ra>
// kernel: tpu_custom_call.1
= control target key start
LH: loop header
LB: loop body
LE: loop exit
PB: predicated region body
PF: predicated region fallthrough
CT: control target
= control target key end

     0   :  { %9 = vsyncpa [#allocation4], 0  ;;  %s1666_s0 = inlined_call_operand.vmem [shape: f32[2,4,256], index: 0, kind: input, shape index: {}]   ;;  %s1667_s1 = inlined_call_operand.vmem [shape: f32[9,4,4], index: 1, kind: input, shape index: {}]   ;;  %s1668_s2 = inlined_call_operand.vmem [shape: f32[2,256], index: 2, kind: input, shape index: {}]   ;;  %s1669_s3 = inlined_call_operand.vmem [shape: f32[4,1], index: 3, kind: input, shape index: {}]   ;;  %s1670_s4 = inlined_call_operand.hbm [shape: f32[2,4,256], index: 4, kind: output, shape index: {}]  }
   0x1   :  { %11 = vsyncpa [#allocation4 + $0x1], 0  ;;  %s1462_s15 = smov 0   ;;  %s1464_s16 = smov 0  }
   0x2   :  { %s1466_s17 = smov 0   ;;  %s1468_s18 = smov 0  }
   0x3 LB: > { %s1483_s19 = sadd.s32 4294967295, %s1417_s18   ;;  %s1240_s20 = sadd.s32 4294967294, %s1417_s18   ;;  %s1417_s18 = sphi %s1468_s18, %s1676_s18   ;;  %s1413_s17 = sphi %s1466_s17, %s1675_s17   ;;  %s1409_s16 = sphi %s1464_s16, %s1674_s16   ;;  %s1405_s15 = sphi %s1462_s15, %s1673_s15  }
   0x4   : > { %s1487_s21 = sadd.s32 1, %s1417_s18   ;;  %s113_s22 = sadd.s32 1, %s1413_s17 }
   0x5   : > { %s110_s23 = ssub.s32 %s1417_s18, %s1487_s21  ;;  %p123_p0 = scmp.ne.s32.totalorder %s1413_s17, %s1409_s16 }
   0x6   : > { %p111_p1 = scmp.eq.s32.totalorder %s110_s23, 0  ;;  %p124_p2 = scmp.eq.s32.totalorder %s1483_s19, 1 }
   0x7   : > { %p129_p3 = scmp.ne.s32.totalorder %s1409_s16, %s1405_s15  ;;  %p130_p4 = scmp.eq.s32.totalorder %s1240_s20, 1 }
   0x8   : > { %s1498_s24 = scalar_select %p111_p1, %s1413_s17, %s113_s22  }
   0x9   : > { %p1500_p5 = por %p124_p2, %p123_p0  ;;  %p1504_p6 = por %p130_p4, %p129_p3 }
   0xa   : > { %p1243_p7 = scmp.ge.s32.totalorder %s1417_s18, 1  ;;  %p165_p8 = scmp.lt.s32.totalorder %s1417_s18, 3 }
   0xc   : > { %p166_p9 = pnand %p1243_p7, %p165_p8 }
   0xd   : > { %p191_p10 = scmp.lt.s32.totalorder (!%p166_p9), %s1483_s19, 1  ;;  %v227_v0 = vlaneseq (!%p166_p9)  ;;  %vm208_vm0 = vcmask (!%p166_p9), 134144   ;;  %v1419_v1 = vmov (!%p166_p9), 0.0   ;;  %vm210_vm1 = vcmask (!%p166_p9), 273544   ;;  %v205_v3 = vld [vmem:[%s1668_s2] sm:$0xf] (!%p166_p9) }
   0xe   : > { %169 = sbr.rel (%p166_p9) target bundleno = 548 (0x224), region = 36  ;;  %209 = vst.msk [vmem:[#allocation2] sm:$0xf] (!%p166_p9), %vm208_vm0, %v1419_v1  ;;  %336 = vmatprep.mubr.f32.mxu1 (!%p166_p9), %v1419_v1  ;;  %735 = vmatprep.mubr.f32.mxu0 (!%p166_p9), %v1419_v1  ;;  %s1420_s8 = smov (!%p166_p9), 17   ;;  %vm220_vm2 = vcmask (!%p166_p9), 1043592   ;;  %vm221_vm3 = vcmask (!%p166_p9), 1047556  }
   0xf   : > { %v1516_v2 = vshrl.u32 (!%p166_p9), %v227_v0, 7  ;;  %211 = vst.msk [vmem:[#allocation2 + $0x8] sm:$0xf] (!%p166_p9), %vm210_vm1, %v1419_v1  ;;  %s1421_s9 = smov (!%p166_p9), 32   ;;  %s1422_s10 = smov (!%p166_p9), 18   ;;  %vm216_vm4 = vcmask (!%p166_p9), 138240   ;;  %vm222_vm5 = vmor (!%p166_p9), %vm221_vm3, %vm220_vm2 }
  0x10   : > { %s1423_s11 = smov (!%p166_p9), 2   ;;  %s1424_s12 = smov (!%p166_p9), 16   ;;  %vm852_vm6 = vcmask (!%p166_p9), 261120   ;;  %vm749_vm7 = vcmask (!%p166_p9), 146432   ;;  %vm449_vm8 = vcmask (!%p166_p9), 15360   ;;  %vm552_vm9 = vcmask (!%p166_p9), 130048  }
  0x11   : > { %v229_v4 = vsub.s32 (!%p166_p9), 0, %v1516_v2  ;;  %v233_v5 = vsub.s32 (!%p166_p9), 2, %v1516_v2  ;;  %v427_v6 = vsub.s32 (!%p166_p9), 1, %v1516_v2  ;;  %v431_v7 = vsub.s32 (!%p166_p9), 3, %v1516_v2  ;;  %s1425_s13 = smov (!%p166_p9), 34   ;;  %s1426_s14 = smov (!%p166_p9), 111  }
  0x12   : > { %s1427_s20 = smov (!%p166_p9), 127   ;;  %s1428_s22 = smov (!%p166_p9), 96   ;;  %vm1049_vm10 = vcmask (!%p166_p9), 277504   ;;  %v1432_v59 = vmov (!%p166_p9), 0   ;;  %v206_v63 = vld [vmem:[%s1669_s3] sm:$0xf] (!%p166_p9) }
  0x13   : > { %v230_v9 = vrot.slane (!%p166_p9), %v205_v3, %v229_v4  ;;  %v234_v10 = vrot.slane (!%p166_p9), %v205_v3, %v233_v5  ;;  %v428_v11 = vrot.slane (!%p166_p9), %v205_v3, %v427_v6  ;;  %v432_v12 = vrot.slane (!%p166_p9), %v205_v3, %v431_v7  ;;  %s1429_s23 = smov (!%p166_p9), 110   ;;  %s1431_s28 = smov (!%p166_p9), 95   ;;  %1353 = vset.pattern.permute.xlu0 (!%p166_p9), %v1432_v59 }
  0x14   : > { %s1433_s29 = smov (!%p166_p9), 112   ;;  %vm260_vm11 = vcmask (!%p166_p9), 1039360   ;;  %vm267_vm12 = vcmask (!%p166_p9), 1043456   ;;  %vm661_vm13 = vcmask (!%p166_p9), 908288   ;;  %vm263_vm14 = vcmask (!%p166_p9), 31744  }
  0x15   : > { %s192_s27 = scalar_select %p191_p10, %s1483_s19, 1  ;;  %v240_v13 = vrot.slane %v230_v9, %v229_v4  ;;  %v244_v14 = vrot.slane %v234_v10, %v229_v4  ;;  %v438_v15 = vrot.slane %v428_v11, %v427_v6  ;;  %v442_v16 = vrot.slane %v432_v12, %v427_v6 }
  0x16   : > { %vm764_vm15 = vcmask 900096   ;;  %vm961_vm1 = vcmask 777216   ;;  %vm464_vm2 = vcmask 1031168   ;;  %vm567_vm3 = vcmask 916480  }
  0x17   : > { %s1279_s30 = sshll.u32 %s192_s27, 3  ;;  %v1532_v17 = vcombine.low %v240_v13, %v244_v14  ;;  %v445_v18 = vcombine.low %v438_v15, %v442_v16  ;;  %s1430_s27 = smov 126   ;;  %v197_v15 = vld [vmem:[%s1667_s1 + $0x4] sm:$0xf]  ;;  %v200_v16 = vld [vmem:[%s1667_s1 + $0x10] sm:$0xf] }
  0x18   : > { %s195_s7 = scalar_lea.vmem %s1666_s0, %s1279_s30  ;;  %s1434_s30 = smov 94  }
  0x19   : > { %v1529_v8 = vld [vmem:[%s195_s7] sm:$0xff]  ;;  %849 = vrot.lane.b32.xlu1 %v1532_v17, %s1421_s9 }
  0x1a   : > { %213 = vrot.lane.b32.xlu0 %v1529_v8, %s1420_s8  ;;  %s188_s8 = sand.u32 1, %s1409_s16  }
  0x1b   : > { %s1244_s9 = sshll.u32 %s188_s8, 3 }
  0x1d   : > { %446 = vrot.lane.b32.xlu1 %v445_v18, %s1423_s11  ;;  %s190_s11 = scalar_lea.vmem [#allocation3], %s1244_s9 }
  0x1e   : > { %746 = vrot.lane.b32.xlu0 %v445_v18, %s1422_s10  ;;  %s1280_s10 = sshll.u32 %s1483_s19, 7  ;;  %s1436_s19 = smov [#allocation3]  }
  0x21   : > { %1046 = vrot.lane.b32.xlu1 %v445_v18, %s1425_s13 }
  0x22   : > { %549 = vrot.lane.b32.xlu0 %v1532_v17, %s1424_s12  ;;  %s1181_s12 = sshll.u32 %s190_s11, 4  ;;  %s1626_s12 = int_to_ptr.vmem [resolvable:$true] %s1181_s12 }
  0x8b   : > { %v850_v24 = vpop.permute.xlu1 %849 }
  0x8c   : > { %v214_v19 = vpop.permute.xlu0 %213  ;;  %v851_v27 = vrot.slane %v850_v24, 4 }
  0x8d   : > { %v215_v20 = vrot.slane %v214_v19, 4 }
  0x8e   : > { %v853_v30 = vsel %vm852_vm6, %v851_v27, %v850_v24 }
  0x8f   : > { %v217_v21 = vsel %vm216_vm4, %v215_v20, %v214_v19  ;;  %224 = vst.msk [vmem:[#allocation2 + $0x8] sm:$0xf] %vm208_vm0, %v215_v20  ;;  %v447_v36 = vpop.permute.xlu1 %446  ;;  %vm867_vm0 = vcmask 785408   ;;  %vm1064_vm4 = vcmask 769024  }
  0x90   : > { %223 = vst.msk [vmem:[#allocation2] sm:$0xff] %vm222_vm5, %v217_v21  ;;  %v747_v25 = vpop.permute.xlu0 %746  ;;  %v448_v38 = vrot.slane %v447_v36, 4 }
  0x91   : > { %v748_v28 = vrot.slane %v747_v25, 4 }
  0x92   : > { %v450_v45 = vsel %vm449_vm8, %v448_v38, %v447_v36 }
  0x93   : > { %v750_v31 = vsel %vm749_vm7, %v748_v28, %v747_v25  ;;  %v1047_v47 = vpop.permute.xlu1 %1046  ;;  %v201_v25 = vld [vmem:[%s1667_s1 + $0x14] sm:$0xf] }
  0x94   : > { %v550_v43 = vpop.permute.xlu0 %549  ;;  %v1048_v51 = vrot.slane %v1047_v47, 4 }
  0x95   : > { %v551_v46 = vrot.slane %v550_v43, 4 }
  0x96   : > { %v651_v22 = vld [vmem:[#allocation2 + $0x8] sm:$0xf]  ;;  %v1050_v55 = vsel %vm1049_vm10, %v1048_v51, %v1047_v47 }
  0x97   : > { %v250_v23 = vld [vmem:[#allocation2 + $0x8] sm:$0xf]  ;;  %659 = vrot.lane.b32.xlu1 %v651_v22, %s1426_s14  ;;  %v1537_v26 = vld [vmem:[#allocation2] sm:$0xff]  ;;  %v553_v50 = vsel %vm552_vm9, %v551_v46, %v550_v43  ;;  %v203_v43 = vld [vmem:[%s1667_s1 + $0x1c] sm:$0xf] }
  0x98   : > { %258 = vrot.lane.b32.xlu0 %v250_v23, %s1427_s20  ;;  %v654_v29 = vcombine.high %v1537_v26, %v1537_v26  ;;  %v745_v32 = vld [vmem:[#allocation2 + $0x8] sm:$0xf]  ;;  %v856_v33 = vmul.f32 %v853_v30, %v1537_v26  ;;  %v753_v34 = vmul.f32 %v1537_v26, %v750_v31  ;;  %v453_v48 = vmul.f32 %v1537_v26, %v450_v45  ;;  %v196_v22 = vld [vmem:[%s1667_s1] sm:$0xf] }
  0x99   : > { %v754_v35 = vmul.f32 %v748_v28, %v745_v32  ;;  %v848_v37 = vld [vmem:[#allocation2 + $0x8] sm:$0xf]  ;;  %v556_v53 = vmul.f32 %v1537_v26, %v553_v50  ;;  %v1053_v57 = vmul.f32 %v1050_v55, %v1537_v26  ;;  %v249_v6 = vmul.f32 %v1537_v26, %v1532_v17 }
  0x9a   : > { %v757_v39 = vcombine.high %v753_v34, %v753_v34  ;;  %v857_v40 = vmul.f32 %v851_v27, %v848_v37  ;;  %v424_v41 = vld [vmem:[#allocation2 + $0x8] sm:$0xf]  ;;  %v860_v44 = vcombine.high %v856_v33, %v856_v33  ;;  %v457_v54 = vcombine.high %v453_v48, %v453_v48 }
  0x9b   : > { %254 = vrot.lane.b32.xlu1 %v1537_v26, %s1427_s20  ;;  %v454_v42 = vmul.f32 %v448_v38, %v424_v41  ;;  %v951_v49 = vld [vmem:[#allocation2 + $0x8] sm:$0xf]  ;;  %v560_v58 = vcombine.high %v556_v53, %v556_v53  ;;  %v1057_v62 = vcombine.high %v1053_v57, %v1053_v57  ;;  %v344_v12 = vcombine.high %v249_v6, %v249_v6 }
  0x9c   : > { %655 = vrot.lane.b32.xlu0 %v1537_v26, %s1426_s14  ;;  %v548_v52 = vld [vmem:[#allocation2 + $0x8] sm:$0xf] }
  0x9d   : > { %v557_v56 = vmul.f32 %v551_v46, %v548_v52  ;;  %v1045_v60 = vld [vmem:[#allocation2 + $0x8] sm:$0xf]  ;;  %v204_v52 = vld [vmem:[%s1667_s1 + $0x20] sm:$0xf] }
  0x9e   : > { %v1054_v61 = vmul.f32 %v1048_v51, %v1045_v60  ;;  %v199_v51 = vld [vmem:[%s1667_s1 + $0xc] sm:$0xf] }
  0x9f   : > { %256 = vrot.lane.b32.xlu1 %v654_v29, %s1427_s20  ;;  %s1624_s20 = scalar_lea.hbm %s1670_s4, %s1280_s10 }
  0xa0   : > { %657 = vrot.lane.b32.xlu0 %v654_v29, %s1426_s14 }
  0xa3   : > { %861 = vrot.lane.b32.xlu1 %v856_v33, %s1428_s22 }
  0xa4   : > { %762 = vrot.lane.b32.xlu0 %v754_v35, %s1429_s23 }
  0xa7   : > { %760 = vrot.lane.b32.xlu1 %v757_v39, %s1429_s23 }
  0xa8   : > { %865 = vrot.lane.b32.xlu0 %v857_v40, %s1428_s22  ;;  %v198_v40 = vld [vmem:[%s1667_s1 + $0x8] sm:$0xf] }
  0xab   : > { %462 = vrot.lane.b32.xlu1 %v454_v42, %s1430_s27 }
  0xac   : > { %758 = vrot.lane.b32.xlu0 %v753_v34, %s1429_s23  ;;  %v202_v34 = vld [vmem:[%s1667_s1 + $0x18] sm:$0xf]  ;;  %s1355_s23 = scalar_lea.vmem %s1626_s12, 128 }
  0xad   : > { %p1356_p11 = scmp.ne.s32.totalorder %s1626_s12, %s1355_s23 }
  0xaf   : > { %863 = vrot.lane.b32.xlu1 %v860_v44, %s1428_s22  ;;  %s1167_s22 = scalar_lea.sflag [#allocation4], %s188_s8  ;;  %p1357_p12 = pnand %p1356_p11, %p1500_p5 }
  0xb0   : > { %957 = vrot.lane.b32.xlu0 %v654_v29, %s1431_s28 }
  0xb1   : > { %p1358_p13 = pneg %p1357_p12 }
  0xb3   : > { %959 = vrot.lane.b32.xlu1 %v951_v49, %s1431_s28 }
  0xb4   : > { %458 = vrot.lane.b32.xlu0 %v453_v48, %s1430_s27 }
  0xb7   : > { %955 = vrot.lane.b32.xlu1 %v1537_v26, %s1431_s28 }
  0xb8   : > { %460 = vrot.lane.b32.xlu0 %v457_v54, %s1430_s27  ;;  %s1359_s27 = sshll.u32 %s1436_s19, 4  ;;  %s1360_s27 = int_to_ptr.vmem [resolvable:$false] %s1359_s27 }
  0xb9   : > { %s1361_s28 = scalar_lea.vmem %s1360_s27, 256  ;;  %p1362_p0 = scmp.lt.s32.totalorder %s1626_s12, %s1360_s27 }
  0xba   : > { %p1363_p1 = scmp.lt.s32.totalorder %s1361_s28, %s1355_s23 }
  0xbb   : > { %565 = vrot.lane.b32.xlu1 %v557_v56, %s1433_s29 }
  0xbc   : > { %563 = vrot.lane.b32.xlu0 %v560_v58, %s1433_s29  ;;  %p1364_p2 = por %p1363_p1, %p1362_p0 }
  0xbe   : > { %p1365_p3 = pnand %p1364_p2, %p1358_p13 }
  0xbf   : > { %1062 = vrot.lane.b32.xlu1 %v1054_v61, %s1434_s30 }
  0xc0   : > { %1060 = vrot.lane.b32.xlu0 %v1057_v62, %s1434_s30 }
  0xc3   : > { %1058 = vrot.lane.b32.xlu1 %v1053_v57, %s1434_s30 }
  0xc4   : > { %561 = vrot.lane.b32.xlu0 %v556_v53, %s1433_s29 }
  0xc8   : > { %1154 = vperm.xlu0 %1353, %v206_v63  }
 0x109   : > { %v660_v0 = vpop.permute.xlu1 %659 }
 0x10a   : > { %v259_v3 = vpop.permute.xlu0 %258 }
 0x10d   : > { %v255_v4 = vpop.permute.xlu1 %254 }
 0x10e   : > { %v656_v5 = vpop.permute.xlu0 %655 }
 0x111   : > { %v257_v7 = vpop.permute.xlu1 %256 }
 0x112   : > { %v658_v9 = vpop.permute.xlu0 %657  ;;  %v262_v10 = vsel %vm260_vm11, %v257_v7, %v259_v3  ;;  %v261_v11 = vsel %vm260_vm11, %v255_v4, %v257_v7 }
 0x113   : > { %1247 = vmatprep.subr.msk.mxu1 %vm267_vm12, %v262_v10  ;;  %v663_v13 = vsel %vm661_vm13, %v658_v9, %v660_v0  ;;  %v662_v14 = vsel %vm661_vm13, %v656_v5, %v658_v9 }
 0x114   : > { %1259 = vmatprep.subr.msk.mxu0 %vm267_vm12, %v663_v13  ;;  %1248 = vmatpush1.msk.msra.mxu1 %vm267_vm12, %v261_v11 }
 0x115   : > { %1260 = vmatpush1.msk.msra.mxu0 %vm267_vm12, %v662_v14  ;;  %v862_v17 = vpop.permute.xlu1 %861  ;;  %1250 = vmatprep.subr.msk.mxu1 %vm267_vm12, %v344_v12 }
 0x116   : > { %v763_v18 = vpop.permute.xlu0 %762  ;;  %1249 = vmatmul.mubr.msk.f32.vlgmr.msra.gmra.mrb[0].mxu1 %vm263_vm14, %v197_v15  ;;  %1261 = vmatmul.mubr.msk.f32.vlgmr.msra.gmra.mrb[0].mxu0 %vm263_vm14, %v200_v16 }
 0x117   : > { %1251 = vmatpush1.msk.msra.mxu1 %vm267_vm12, %v249_v6  ;;  %838 = vmatprep.mubr.f32.mxu0 %v1419_v1 }
 0x118   : > { %416 = vmatprep.mubr.f32.mxu1 %v1419_v1 }
 0x119   : > { %v761_v19 = vpop.permute.xlu1 %760 }
 0x11a   : > { %v766_v20 = vsel %vm764_vm15, %v761_v19, %v763_v18  ;;  %v866_v21 = vpop.permute.xlu0 %865 }
 0x11b   : > { %1262 = vmatprep.subr.msk.mxu0 %vm267_vm12, %v766_v20 }
 0x11d   : > { %v463_v23 = vpop.permute.xlu1 %462 }
 0x11e   : > { %v759_v24 = vpop.permute.xlu0 %758  ;;  %1252 = vmatmul.mubr.msk.f32.vlgmr.msra.gmra.mrb[0].mxu1 %vm263_vm14, %v196_v22 }
 0x11f   : > { %v765_v26 = vsel %vm764_vm15, %v759_v24, %v761_v19  ;;  %538 = vmatprep.mubr.f32.mxu1 %v1419_v1 }
 0x120   : > { %1263 = vmatpush1.msk.msra.mxu0 %vm267_vm12, %v765_v26 }
 0x121   : > { %1264 = vmatmul.mubr.msk.f32.vlgmr.msra.gmra.mrb[0].mxu0 %vm263_vm14, %v201_v25  ;;  %v864_v27 = vpop.permute.xlu1 %863 }
 0x122   : > { %v868_v28 = vsel %vm867_vm0, %v862_v17, %v864_v27  ;;  %v869_v29 = vsel %vm867_vm0, %v864_v27, %v866_v21  ;;  %v958_v30 = vpop.permute.xlu0 %957  ;;  %941 = vmatprep.mubr.f32.mxu0 %v1419_v1 }
 0x123   : > { %1265 = vmatprep.subr.msk.mxu0 %vm267_vm12, %v869_v29 }
 0x124   : > { %1266 = vmatpush1.msk.msra.mxu0 %vm267_vm12, %v868_v28 }
 0x125   : > { %v960_v31 = vpop.permute.xlu1 %959 }
 0x126   : > { %v963_v32 = vsel %vm961_vm1, %v958_v30, %v960_v31  ;;  %v459_v33 = vpop.permute.xlu0 %458 }
 0x127   : > { %1268 = vmatprep.subr.msk.mxu0 %vm267_vm12, %v963_v32 }
 0x129   : > { %1267 = vmatmul.mubr.msk.f32.vlgmr.msra.gmra.mrb[0].mxu0 %vm263_vm14, %v202_v34  ;;  %v956_v35 = vpop.permute.xlu1 %955 }
 0x12a   : > { %v962_v36 = vsel %vm961_vm1, %v956_v35, %v958_v30  ;;  %v461_v37 = vpop.permute.xlu0 %460  ;;  %1035 = vmatprep.mubr.f32.mxu0 %v1419_v1 }
 0x12b   : > { %v465_v38 = vsel %vm464_vm2, %v459_v33, %v461_v37  ;;  %v466_v39 = vsel %vm464_vm2, %v461_v37, %v463_v23  ;;  %1269 = vmatpush1.msk.msra.mxu0 %vm267_vm12, %v962_v36 }
 0x12c   : > { %1253 = vmatprep.subr.msk.mxu1 %vm267_vm12, %v466_v39 }
 0x12d   : > { %1254 = vmatpush1.msk.msra.mxu1 %vm267_vm12, %v465_v38  ;;  %v566_v41 = vpop.permute.xlu1 %565 }
 0x12e   : > { %v564_v42 = vpop.permute.xlu0 %563  ;;  %1255 = vmatmul.mubr.msk.f32.vlgmr.msra.gmra.mrb[0].mxu1 %vm263_vm14, %v198_v40 }
 0x12f   : > { %v569_v44 = vsel %vm567_vm3, %v564_v42, %v566_v41  ;;  %641 = vmatprep.mubr.f32.mxu1 %v1419_v1 }
 0x130   : > { %1256 = vmatprep.subr.msk.mxu1 %vm267_vm12, %v569_v44 }
 0x131   : > { %1270 = vmatmul.mubr.msk.f32.vlgmr.msra.gmra.mrb[0].mxu0 %vm263_vm14, %v203_v43  ;;  %v1063_v45 = vpop.permute.xlu1 %1062 }
 0x132   : > { %v1061_v46 = vpop.permute.xlu0 %1060  ;;  %1138 = vmatprep.mubr.f32.mxu0 %v1419_v1  ;;  %v1435_v1 = vmov 839922192  }
 0x133   : > { %v1066_v47 = vsel %vm1064_vm4, %v1061_v46, %v1063_v45  ;;  %v1157_v54 = vunpack.c.l.s4 %v1435_v1 }
 0x134   : > { %1271 = vmatprep.subr.msk.mxu0 %vm267_vm12, %v1066_v47 }
 0x135   : > { %v1059_v48 = vpop.permute.xlu1 %1058  ;;  %v1158_v55 = vunpack.c.0.s8 %v1157_v54 }
 0x136   : > { %v1065_v49 = vsel %vm1064_vm4, %v1059_v48, %v1061_v46  ;;  %v562_v50 = vpop.permute.xlu0 %561 }
 0x137   : > { %v568_v53 = vsel %vm567_vm3, %v562_v50, %v564_v42  ;;  %1272 = vmatpush1.msk.msra.mxu0 %vm267_vm12, %v1065_v49  ;;  %v1161_v59 = vsub.s32 %v1158_v55, %v1516_v2 }
 0x138   : > { %1257 = vmatpush1.msk.msra.mxu1 %vm267_vm12, %v568_v53 }
 0x139   : > { %1258 = vmatmul.mubr.msk.f32.vlgmr.msra.gmra.mrb[0].mxu1 %vm263_vm14, %v199_v51  ;;  %1273 = vmatmul.mubr.msk.f32.vlgmr.msra.gmra.mrb[0].mxu0 %vm263_vm14, %v204_v52 }
 0x147   : > { %v1155_v56 = vpop.permute.xlu0 %1154 }
 0x148   : > { %v1162_v3 = vrot.slane %v1155_v56, %v1161_v59 }
 0x20c   : > { %v643_v57 = vpop.f32.mrb[0].mxu1  ;;  %v1140_v58 = vpop.f32.mrb[0].mxu0 }
 0x20d   : > { %v1281_v60 = vadd.f32 %v1140_v58, %v643_v57  ;;  %v645_v61 = vpop.f32.mrb[1].mxu1  ;;  %v1142_v62 = vpop.f32.mrb[1].mxu0 }
 0x20e   : > { %v1282_v63 = vadd.f32 %v1142_v62, %v645_v61 }
 0x210   : > { %v1149_v0 = vcombine.low %v1281_v60, %v1282_v63 }
 0x212   : > { %v1151_v4 = vadd.f32 %v1149_v0, %v1529_v8 }
 0x214   : > { %v1164_v5 = vadd.f32 %v1162_v3, %v1151_v4 }
 0x216   : > { %1165 = vst [vmem:[%s190_s11] sm:$0xff] %v1164_v5 }
 0x217   : > { %1368 = shalt.err (!%p1365_p3)
}
 0x218   : > { %s1369_s29 = scalar_lea.hbm %s1624_s20, 128  ;;  %s1373_s6 = scalar_lea.hbm %s1670_s4, 256 }
 0x219   : > { %p1370_p4 = scmp.ne.s32.totalorder %s1624_s20, %s1369_s29  ;;  %p1374_p9 = scmp.lt.u32.totalorder %s1624_s20, %s1670_s4 }
 0x21a   : > { %p1375_p10 = scmp.lt.u32.totalorder %s1373_s6, %s1369_s29  ;;  %p1377_p12 = scmp.lt.u32.totalorder %s1369_s29, %s1624_s20 }
 0x21b   : > { %p1371_p7 = pnand %p1370_p4, %p1500_p5 }
 0x21c   : > { %p1376_p11 = por %p1375_p10, %p1374_p9 }
 0x21d   : > { %p1372_p8 = pneg %p1371_p7 }
 0x21e   : > { %p1378_p13 = por %p1377_p12, %p1376_p11 }
 0x220   : > { %p1379_p0 = pnand %p1378_p13, %p1372_p8 }
 0x222   : > { %1382 = shalt.err (!%p1379_p0)
}
 0x223   : > { %1297 = dma.vmem_to_hbm [thread:$0]  (%p1500_p5), %s1626_s12, 128, %s1624_s20, %s1167_s22  }
 0x224 PF: > { %p1303_p1 = scmp.ge.s32.totalorder %s1417_s18, 2  ;;  %s1193_s9 = sand.u32 1, %s1405_s15  }
 0x225   : > { %s1194_s10 = scalar_lea.sflag [#allocation4], %s1193_s9 }
 0x226   : > { %p1300_p2 = pnand %p1303_p1, %p1504_p6 }
 0x228   : > { %1400 = dma.done.wait (!%p1300_p2), %s1194_s10, 128  }
 0x229   : > { %1402 = vsyncadd (!%p1300_p2), %s1194_s10, 4294967168  ;;  %p14_p3 = scmp.ge.s32.totalorder %s1487_s21, 4   ;;  %s1673_s15 = smov %s1409_s16 }
 0x22a   : > { %s1674_s16 = smov %s1413_s17  ;;  %s1675_s17 = smov %s1498_s24 }
 0x22b   : > { %s1676_s18 = smov %s1487_s21  ;;  %16 = sbr.rel (!%p14_p3) target bundleno = 3 (0x3), region = 71 }
 0x232   :  { %1199 = vsyncpa [#allocation4], 1 }
 0x233   :  { %1201 = vsyncpa [#allocation4 + $0x1], 1 }

</bundles_post_ra>
